<compile_context>
chip_gen: v7x
topology: tpu7x:2x2x1
jax: 0.10.0
libtpu: 0.0.40
codegen_flags: <defaults>
</compile_context>

<pallas_src>
import functools

import jax
import jax.numpy as jnp
import numpy as np
from jax import lax
from jax.experimental import pallas as pl
from jax.experimental.pallas import tpu as pltpu


# -----------------------------------------------------------------------------
# Pallas kernel: whole sequence in one invocation
# -----------------------------------------------------------------------------
def _network88_kernel(
    x_ref,        # (B*T, F)   batch-major flattened input (row r -> b=r//T, t=r%T)
    wih_t_ref,    # (F, 4H)    W_ih^T with i/f/o columns pre-scaled by 0.5
    whh_t_ref,    # (H, 4H)    W_hh^T with i/f/o columns pre-scaled by 0.5
    bias_ref,     # (1, 4H)    (b_ih + b_hh), i/f/o lanes pre-scaled by 0.5
    gscale_ref,   # (1, 4H)    per-lane affine scale  [0.5, 0.5, 1.0, 0.5] per gate
    goff_ref,     # (1, 4H)    per-lane affine offset [0.5, 0.5, 0.0, 0.5] per gate
    wout_t_ref,   # (H, FC)    out_linear weight^T
    bout_ref,     # (1, FC)    out_linear bias
    h0_ref,       # (B, H)
    c0_ref,       # (B, H)
    out_ref,      # (B*T, FC)  batch-major output for all timesteps
    hn_ref,       # (B, H)     final hidden state
    cn_ref,       # (B, H)     final cell state
    *,
    seq_len,
    batch,
    hidden_size,
):
    T, B, H = seq_len, batch, hidden_size

    # ---- Prologue: input projection for ALL timesteps in one MXU call. ------
    # (B*T, F) @ (F, 4H) + (1, 4H)  ->  (B*T, 4H), PyTorch gate order [i,f,g,o]
    # (i/f/o pre-activations arrive pre-scaled by 0.5 for the tanh rewrite).
    pre_bm = (
        jnp.dot(x_ref[...], wih_t_ref[...], preferred_element_type=jnp.float32)
        + bias_ref[...]
    )

    # Per-timestep (B, 4H) addends, gathered once with static row slices.
    # Batch-major row index of (b, t) is b*T + t.  All off the serial chain.
    pre_t = [
        jnp.concatenate(
            [pre_bm[b * T + t:b * T + t + 1, :] for b in range(B)], axis=0)
        for t in range(T)
    ]

    # Hoisted loop invariants (broadcasts done ONCE, not per iteration).
    whh_t = whh_t_ref[...]                                   # (H, 4H)
    gscale = jnp.broadcast_to(gscale_ref[...], (B, 4 * H))   # (B, 4H)
    goff = jnp.broadcast_to(goff_ref[...], (B, 4 * H))       # (B, 4H)

    h = h0_ref[...]                 # (B, H)
    c = c0_ref[...]                 # (B, H)
    hs = []

    # ---- Recurrence: fully unrolled (T small & fixed); all indices static. --
    # Serial chain per step: h @ W_hh^T, ONE tanh over the (B,4H) slab, a
    # per-lane affine fixup, the cell update, and one tanh(c).
    for t in range(T):
        zs = pre_t[t] + jnp.dot(h, whh_t, preferred_element_type=jnp.float32)
        act = jnp.tanh(zs) * gscale + goff        # i/f/o -> sigmoid, g -> tanh
        i_g = act[:, 0 * H:1 * H]
        f_g = act[:, 1 * H:2 * H]
        g_g = act[:, 2 * H:3 * H]
        o_g = act[:, 3 * H:4 * H]
        c = f_g * c + i_g * g_g
        h = o_g * jnp.tanh(c)
        hs.append(h)                              # kept in registers, no scratch

    # ---- Epilogue: batch-major hidden trajectory + hoisted output Linear. ---
    # Row b*T + t of hs_bm is h_t[b]  ->  output is directly batch-major.
    hs_bm = jnp.concatenate(
        [hs[t][b:b + 1, :] for b in range(B) for t in range(T)], axis=0)   # (B*T, H)
    y = jnp.dot(hs_bm, wout_t_ref[...],
                preferred_element_type=jnp.float32) + bout_ref[...]
    out_ref[...] = y.astype(out_ref.dtype)

    # Final hidden/cell state, written exactly once.
    hn_ref[...] = h.astype(hn_ref.dtype)
    cn_ref[...] = c.astype(cn_ref.dtype)


# -----------------------------------------------------------------------------
# Wrapper
# -----------------------------------------------------------------------------
@functools.partial(jax.jit, static_argnames=("n_features", "n_categories", "hidden_size"))
def network88_forward(x_btF, h0, c0, params, *, n_features, n_categories, hidden_size):
    """x_btF: (B, T, F); h0/c0: (1, B, H).  Returns (out, (h_n, c_n)) with
    out of shape (B, T, n_features, n_categories)."""
    B, T, F = x_btF.shape
    H = hidden_size
    FC = n_features * n_categories
    G = 4 * H

    # Batch-major flatten: pure metadata (row-major collapse), no transpose.
    x_flat = x_btF.reshape(B * T, F).astype(jnp.float32)

    # sigmoid(z) = 0.5*tanh(z/2) + 0.5  ->  pre-scale i/f/o gate rows by 0.5 so
    # the kernel applies a single tanh over the whole gate slab per step, then
    # a per-lane affine fixup.  Gate order is PyTorch's [i, f, g, o].
    half = jnp.full((H,), 0.5, jnp.float32)
    gate_scale = jnp.concatenate([half, half, jnp.ones((H,), jnp.float32), half])
    gate_offset = jnp.concatenate([half, half, jnp.zeros((H,), jnp.float32), half])

    w_ih = params["w_ih"].astype(jnp.float32) * gate_scale[:, None]     # (4H, F)
    w_hh = params["w_hh"].astype(jnp.float32) * gate_scale[:, None]     # (4H, H)
    bias = (params["b_ih"] + params["b_hh"]).astype(jnp.float32) * gate_scale

    wih_t = w_ih.T                                                      # (F, 4H)
    whh_t = w_hh.T                                                      # (H, 4H)
    bias2 = bias.reshape(1, G)
    gscale2 = gate_scale.reshape(1, G)
    goff2 = gate_offset.reshape(1, G)
    wout_t = params["w_out"].T.astype(jnp.float32)                      # (H, FC)
    bout = params["b_out"].reshape(1, FC).astype(jnp.float32)           # (1, FC)
    h0_2d = h0[0].astype(jnp.float32)                                   # (B, H)
    c0_2d = c0[0].astype(jnp.float32)                                   # (B, H)

    vmem = pl.BlockSpec(memory_space=pltpu.MemorySpace.VMEM)

    out_flat, h_n, c_n = pl.pallas_call(
        functools.partial(_network88_kernel, seq_len=T, batch=B, hidden_size=H),
        out_shape=(
            jax.ShapeDtypeStruct((B * T, FC), jnp.float32),
            jax.ShapeDtypeStruct((B, H), jnp.float32),
            jax.ShapeDtypeStruct((B, H), jnp.float32),
        ),
        in_specs=[vmem] * 10,
        out_specs=(vmem, vmem, vmem),
    )(x_flat, wih_t, whh_t, bias2, gscale2, goff2, wout_t, bout, h0_2d, c0_2d)

    # Batch-major output: only a metadata reshape, matching
    # output.view(-1, seq, n_features, n_categories) of the torch module.
    out = out_flat.reshape(B, T, n_features, n_categories)
    return out, (h_n[None], c_n[None])


# -----------------------------------------------------------------------------
# Pure-JAX reference (same math as torch LSTM + Linear) for verification
# -----------------------------------------------------------------------------
def network88_reference(x_btF, h0, c0, params, *, n_features, n_categories, hidden_size):
    H = hidden_size
    w_ih, w_hh = params["w_ih"], params["w_hh"]
    b_ih, b_hh = params["b_ih"], params["b_hh"]
    w_out, b_out = params["w_out"], params["b_out"]

    def step(carry, x_t):
        h, c = carry
        gates = x_t @ w_ih.T + h @ w_hh.T + b_ih + b_hh
        i = jax.nn.sigmoid(gates[:, 0 * H:1 * H])
        f = jax.nn.sigmoid(gates[:, 1 * H:2 * H])
        g = jnp.tanh(gates[:, 2 * H:3 * H])
        o = jax.nn.sigmoid(gates[:, 3 * H:4 * H])
        c_new = f * c + i * g
        h_new = o * jnp.tanh(c_new)
        return (h_new, c_new), h_new

    x_tbF = jnp.transpose(x_btF, (1, 0, 2))
    (h_n, c_n), hs = lax.scan(step, (h0[0], c0[0]), x_tbF)
    rnn_out = jnp.transpose(hs, (1, 0, 2))                   # (B, T, H)
    lin = rnn_out @ w_out.T + b_out                          # (B, T, F*C)
    B, T = x_btF.shape[0], x_btF.shape[1]
    out = lin.reshape(B, T, n_features, n_categories)
    return out, (h_n[None], c_n[None])


# -----------------------------------------------------------------------------
if __name__ == "__main__":
    # Module config (n_layers=1, unidirectional LSTM)
    hidden_size = 32
    n_layers = 1
    n_features = 8
    n_categories = 3
    B, T = 2, 8
    H = hidden_size

    key = jax.random.PRNGKey(0)
    keys = jax.random.split(key, 10)
    k = 1.0 / np.sqrt(H)

    params = {
        "w_ih": jax.random.uniform(keys[0], (4 * H, n_features), jnp.float32, -k, k),
        "w_hh": jax.random.uniform(keys[1], (4 * H, H), jnp.float32, -k, k),
        "b_ih": jax.random.uniform(keys[2], (4 * H,), jnp.float32, -k, k),
        "b_hh": jax.random.uniform(keys[3], (4 * H,), jnp.float32, -k, k),
        "w_out": jax.random.uniform(keys[4], (n_features * n_categories, H), jnp.float32, -k, k),
        "b_out": jax.random.uniform(keys[5], (n_features * n_categories,), jnp.float32, -k, k),
    }

    x = jax.random.normal(keys[6], (B, T, n_features), jnp.float32)
    h0 = jax.random.normal(keys[7], (n_layers, B, H), jnp.float32)
    c0 = jax.random.normal(keys[8], (n_layers, B, H), jnp.float32)

    out, (h_n, c_n) = network88_forward(
        x, h0, c0, params,
        n_features=n_features, n_categories=n_categories, hidden_size=hidden_size)
    jax.block_until_ready(out)

    ref_out, (ref_hn, ref_cn) = network88_reference(
        x, h0, c0, params,
        n_features=n_features, n_categories=n_categories, hidden_size=hidden_size)

    # Note: the tanh-form sigmoid is exact in real arithmetic; only rounding
    # differs, which stays well inside the 1e-5 tolerance at these magnitudes.
    np.testing.assert_allclose(np.asarray(out), np.asarray(ref_out), rtol=1e-5, atol=1e-5)
    np.testing.assert_allclose(np.asarray(h_n), np.asarray(ref_hn), rtol=1e-5, atol=1e-5)
    np.testing.assert_allclose(np.asarray(c_n), np.asarray(ref_cn), rtol=1e-5, atol=1e-5)

    # TODO(synk): dropout=0.5 between stacked RNN layers (n_layers>1, training
    # mode only) and the bidirectional path are not implemented; this kernel
    # covers the single-layer unidirectional inference forward.
    print("KERNEL_OK")
</pallas_src>

<mosaic_0001>
module attributes {stable_mosaic.version = 11 : i64} {
  func.func @_network88_kernel(%arg0: memref<16x8xf32, #tpu.memory_space<vmem>>, %arg1: memref<8x128xf32, #tpu.memory_space<vmem>>, %arg2: memref<32x128xf32, #tpu.memory_space<vmem>>, %arg3: memref<1x128xf32, #tpu.memory_space<vmem>>, %arg4: memref<1x128xf32, #tpu.memory_space<vmem>>, %arg5: memref<1x128xf32, #tpu.memory_space<vmem>>, %arg6: memref<32x24xf32, #tpu.memory_space<vmem>>, %arg7: memref<1x24xf32, #tpu.memory_space<vmem>>, %arg8: memref<2x32xf32, #tpu.memory_space<vmem>>, %arg9: memref<2x32xf32, #tpu.memory_space<vmem>>, %arg10: memref<16x24xf32, #tpu.memory_space<vmem>>, %arg11: memref<2x32xf32, #tpu.memory_space<vmem>>, %arg12: memref<2x32xf32, #tpu.memory_space<vmem>>) attributes {dimension_semantics = [], scalar_prefetch = 0 : i64, scratch_operands = 0 : i64, tpu.core_type = #tpu.core_type<tc>} {
    %c0 = arith.constant 0 : index
    %c0_0 = arith.constant 0 : index
    %0 = vector.load %arg0[%c0, %c0_0] : memref<16x8xf32, #tpu.memory_space<vmem>>, vector<16x8xf32>
    %c0_1 = arith.constant 0 : index
    %c0_2 = arith.constant 0 : index
    %1 = vector.load %arg1[%c0_1, %c0_2] : memref<8x128xf32, #tpu.memory_space<vmem>>, vector<8x128xf32>
    %cst = arith.constant dense<0.000000e+00> : vector<16x128xf32>
    %2 = tpu.matmul %0, %1, %cst {dimension_numbers = #tpu.dot_dimension_numbers<[1], [0], [0], [1], [0, 0, 1, 1], [], []>} : vector<16x8xf32>, vector<8x128xf32>, vector<16x128xf32> -> vector<16x128xf32>
    %c0_3 = arith.constant 0 : index
    %c0_4 = arith.constant 0 : index
    %3 = vector.load %arg3[%c0_3, %c0_4] : memref<1x128xf32, #tpu.memory_space<vmem>>, vector<1x128xf32>
    %4 = vector.broadcast %3 : vector<1x128xf32> to vector<16x128xf32>
    %5 = arith.addf %2, %4 : vector<16x128xf32>
    %6 = vector.extract_strided_slice %5 {offsets = [0, 0], sizes = [1, 128], strides = [1, 1]} : vector<16x128xf32> to vector<1x128xf32>
    %7 = vector.extract_strided_slice %5 {offsets = [8, 0], sizes = [1, 128], strides = [1, 1]} : vector<16x128xf32> to vector<1x128xf32>
    %8 = tpu.concatenate %6, %7 in 0 : vector<1x128xf32>, vector<1x128xf32> -> vector<2x128xf32>
    %9 = vector.extract_strided_slice %5 {offsets = [1, 0], sizes = [1, 128], strides = [1, 1]} : vector<16x128xf32> to vector<1x128xf32>
    %10 = vector.extract_strided_slice %5 {offsets = [9, 0], sizes = [1, 128], strides = [1, 1]} : vector<16x128xf32> to vector<1x128xf32>
    %11 = tpu.concatenate %9, %10 in 0 : vector<1x128xf32>, vector<1x128xf32> -> vector<2x128xf32>
    %12 = vector.extract_strided_slice %5 {offsets = [2, 0], sizes = [1, 128], strides = [1, 1]} : vector<16x128xf32> to vector<1x128xf32>
    %13 = vector.extract_strided_slice %5 {offsets = [10, 0], sizes = [1, 128], strides = [1, 1]} : vector<16x128xf32> to vector<1x128xf32>
    %14 = tpu.concatenate %12, %13 in 0 : vector<1x128xf32>, vector<1x128xf32> -> vector<2x128xf32>
    %15 = vector.extract_strided_slice %5 {offsets = [3, 0], sizes = [1, 128], strides = [1, 1]} : vector<16x128xf32> to vector<1x128xf32>
    %16 = vector.extract_strided_slice %5 {offsets = [11, 0], sizes = [1, 128], strides = [1, 1]} : vector<16x128xf32> to vector<1x128xf32>
    %17 = tpu.concatenate %15, %16 in 0 : vector<1x128xf32>, vector<1x128xf32> -> vector<2x128xf32>
    %18 = vector.extract_strided_slice %5 {offsets = [4, 0], sizes = [1, 128], strides = [1, 1]} : vector<16x128xf32> to vector<1x128xf32>
    %19 = vector.extract_strided_slice %5 {offsets = [12, 0], sizes = [1, 128], strides = [1, 1]} : vector<16x128xf32> to vector<1x128xf32>
    %20 = tpu.concatenate %18, %19 in 0 : vector<1x128xf32>, vector<1x128xf32> -> vector<2x128xf32>
    %21 = vector.extract_strided_slice %5 {offsets = [5, 0], sizes = [1, 128], strides = [1, 1]} : vector<16x128xf32> to vector<1x128xf32>
    %22 = vector.extract_strided_slice %5 {offsets = [13, 0], sizes = [1, 128], strides = [1, 1]} : vector<16x128xf32> to vector<1x128xf32>
    %23 = tpu.concatenate %21, %22 in 0 : vector<1x128xf32>, vector<1x128xf32> -> vector<2x128xf32>
    %24 = vector.extract_strided_slice %5 {offsets = [6, 0], sizes = [1, 128], strides = [1, 1]} : vector<16x128xf32> to vector<1x128xf32>
    %25 = vector.extract_strided_slice %5 {offsets = [14, 0], sizes = [1, 128], strides = [1, 1]} : vector<16x128xf32> to vector<1x128xf32>
    %26 = tpu.concatenate %24, %25 in 0 : vector<1x128xf32>, vector<1x128xf32> -> vector<2x128xf32>
    %27 = vector.extract_strided_slice %5 {offsets = [7, 0], sizes = [1, 128], strides = [1, 1]} : vector<16x128xf32> to vector<1x128xf32>
    %28 = vector.extract_strided_slice %5 {offsets = [15, 0], sizes = [1, 128], strides = [1, 1]} : vector<16x128xf32> to vector<1x128xf32>
    %29 = tpu.concatenate %27, %28 in 0 : vector<1x128xf32>, vector<1x128xf32> -> vector<2x128xf32>
    %c0_5 = arith.constant 0 : index
    %c0_6 = arith.constant 0 : index
    %30 = vector.load %arg2[%c0_5, %c0_6] : memref<32x128xf32, #tpu.memory_space<vmem>>, vector<32x128xf32>
    %c0_7 = arith.constant 0 : index
    %c0_8 = arith.constant 0 : index
    %31 = vector.load %arg4[%c0_7, %c0_8] : memref<1x128xf32, #tpu.memory_space<vmem>>, vector<1x128xf32>
    %32 = vector.shape_cast %31 : vector<1x128xf32> to vector<1x128xf32>
    %33 = vector.broadcast %32 : vector<1x128xf32> to vector<2x128xf32>
    %c0_9 = arith.constant 0 : index
    %c0_10 = arith.constant 0 : index
    %34 = vector.load %arg5[%c0_9, %c0_10] : memref<1x128xf32, #tpu.memory_space<vmem>>, vector<1x128xf32>
    %35 = vector.shape_cast %34 : vector<1x128xf32> to vector<1x128xf32>
    %36 = vector.broadcast %35 : vector<1x128xf32> to vector<2x128xf32>
    %c0_11 = arith.constant 0 : index
    %c0_12 = arith.constant 0 : index
    %37 = vector.load %arg8[%c0_11, %c0_12] : memref<2x32xf32, #tpu.memory_space<vmem>>, vector<2x32xf32>
    %c0_13 = arith.constant 0 : index
    %c0_14 = arith.constant 0 : index
    %38 = vector.load %arg9[%c0_13, %c0_14] : memref<2x32xf32, #tpu.memory_space<vmem>>, vector<2x32xf32>
    %cst_15 = arith.constant dense<0.000000e+00> : vector<2x128xf32>
    %39 = tpu.matmul %37, %30, %cst_15 {dimension_numbers = #tpu.dot_dimension_numbers<[1], [0], [0], [1], [0, 0, 1, 1], [], []>} : vector<2x32xf32>, vector<32x128xf32>, vector<2x128xf32> -> vector<2x128xf32>
    %40 = arith.addf %8, %39 : vector<2x128xf32>
    %41 = math.tanh %40 : vector<2x128xf32>
    %42 = arith.mulf %41, %33 : vector<2x128xf32>
    %43 = arith.addf %42, %36 : vector<2x128xf32>
    %44 = vector.extract_strided_slice %43 {offsets = [0, 0], sizes = [2, 32], strides = [1, 1]} : vector<2x128xf32> to vector<2x32xf32>
    %45 = vector.extract_strided_slice %43 {offsets = [0, 32], sizes = [2, 32], strides = [1, 1]} : vector<2x128xf32> to vector<2x32xf32>
    %46 = vector.extract_strided_slice %43 {offsets = [0, 64], sizes = [2, 32], strides = [1, 1]} : vector<2x128xf32> to vector<2x32xf32>
    %47 = vector.extract_strided_slice %43 {offsets = [0, 96], sizes = [2, 32], strides = [1, 1]} : vector<2x128xf32> to vector<2x32xf32>
    %48 = arith.mulf %45, %38 : vector<2x32xf32>
    %49 = arith.mulf %44, %46 : vector<2x32xf32>
    %50 = arith.addf %48, %49 : vector<2x32xf32>
    %51 = math.tanh %50 : vector<2x32xf32>
    %52 = arith.mulf %47, %51 : vector<2x32xf32>
    %cst_16 = arith.constant dense<0.000000e+00> : vector<2x128xf32>
    %53 = tpu.matmul %52, %30, %cst_16 {dimension_numbers = #tpu.dot_dimension_numbers<[1], [0], [0], [1], [0, 0, 1, 1], [], []>} : vector<2x32xf32>, vector<32x128xf32>, vector<2x128xf32> -> vector<2x128xf32>
    %54 = arith.addf %11, %53 : vector<2x128xf32>
    %55 = math.tanh %54 : vector<2x128xf32>
    %56 = arith.mulf %55, %33 : vector<2x128xf32>
    %57 = arith.addf %56, %36 : vector<2x128xf32>
    %58 = vector.extract_strided_slice %57 {offsets = [0, 0], sizes = [2, 32], strides = [1, 1]} : vector<2x128xf32> to vector<2x32xf32>
    %59 = vector.extract_strided_slice %57 {offsets = [0, 32], sizes = [2, 32], strides = [1, 1]} : vector<2x128xf32> to vector<2x32xf32>
    %60 = vector.extract_strided_slice %57 {offsets = [0, 64], sizes = [2, 32], strides = [1, 1]} : vector<2x128xf32> to vector<2x32xf32>
    %61 = vector.extract_strided_slice %57 {offsets = [0, 96], sizes = [2, 32], strides = [1, 1]} : vector<2x128xf32> to vector<2x32xf32>
    %62 = arith.mulf %59, %50 : vector<2x32xf32>
    %63 = arith.mulf %58, %60 : vector<2x32xf32>
    %64 = arith.addf %62, %63 : vector<2x32xf32>
    %65 = math.tanh %64 : vector<2x32xf32>
    %66 = arith.mulf %61, %65 : vector<2x32xf32>
    %cst_17 = arith.constant dense<0.000000e+00> : vector<2x128xf32>
    %67 = tpu.matmul %66, %30, %cst_17 {dimension_numbers = #tpu.dot_dimension_numbers<[1], [0], [0], [1], [0, 0, 1, 1], [], []>} : vector<2x32xf32>, vector<32x128xf32>, vector<2x128xf32> -> vector<2x128xf32>
    %68 = arith.addf %14, %67 : vector<2x128xf32>
    %69 = math.tanh %68 : vector<2x128xf32>
    %70 = arith.mulf %69, %33 : vector<2x128xf32>
    %71 = arith.addf %70, %36 : vector<2x128xf32>
    %72 = vector.extract_strided_slice %71 {offsets = [0, 0], sizes = [2, 32], strides = [1, 1]} : vector<2x128xf32> to vector<2x32xf32>
    %73 = vector.extract_strided_slice %71 {offsets = [0, 32], sizes = [2, 32], strides = [1, 1]} : vector<2x128xf32> to vector<2x32xf32>
    %74 = vector.extract_strided_slice %71 {offsets = [0, 64], sizes = [2, 32], strides = [1, 1]} : vector<2x128xf32> to vector<2x32xf32>
    %75 = vector.extract_strided_slice %71 {offsets = [0, 96], sizes = [2, 32], strides = [1, 1]} : vector<2x128xf32> to vector<2x32xf32>
    %76 = arith.mulf %73, %64 : vector<2x32xf32>
    %77 = arith.mulf %72, %74 : vector<2x32xf32>
    %78 = arith.addf %76, %77 : vector<2x32xf32>
    %79 = math.tanh %78 : vector<2x32xf32>
    %80 = arith.mulf %75, %79 : vector<2x32xf32>
    %cst_18 = arith.constant dense<0.000000e+00> : vector<2x128xf32>
    %81 = tpu.matmul %80, %30, %cst_18 {dimension_numbers = #tpu.dot_dimension_numbers<[1], [0], [0], [1], [0, 0, 1, 1], [], []>} : vector<2x32xf32>, vector<32x128xf32>, vector<2x128xf32> -> vector<2x128xf32>
    %82 = arith.addf %17, %81 : vector<2x128xf32>
    %83 = math.tanh %82 : vector<2x128xf32>
    %84 = arith.mulf %83, %33 : vector<2x128xf32>
    %85 = arith.addf %84, %36 : vector<2x128xf32>
    %86 = vector.extract_strided_slice %85 {offsets = [0, 0], sizes = [2, 32], strides = [1, 1]} : vector<2x128xf32> to vector<2x32xf32>
    %87 = vector.extract_strided_slice %85 {offsets = [0, 32], sizes = [2, 32], strides = [1, 1]} : vector<2x128xf32> to vector<2x32xf32>
    %88 = vector.extract_strided_slice %85 {offsets = [0, 64], sizes = [2, 32], strides = [1, 1]} : vector<2x128xf32> to vector<2x32xf32>
    %89 = vector.extract_strided_slice %85 {offsets = [0, 96], sizes = [2, 32], strides = [1, 1]} : vector<2x128xf32> to vector<2x32xf32>
    %90 = arith.mulf %87, %78 : vector<2x32xf32>
    %91 = arith.mulf %86, %88 : vector<2x32xf32>
    %92 = arith.addf %90, %91 : vector<2x32xf32>
    %93 = math.tanh %92 : vector<2x32xf32>
    %94 = arith.mulf %89, %93 : vector<2x32xf32>
    %cst_19 = arith.constant dense<0.000000e+00> : vector<2x128xf32>
    %95 = tpu.matmul %94, %30, %cst_19 {dimension_numbers = #tpu.dot_dimension_numbers<[1], [0], [0], [1], [0, 0, 1, 1], [], []>} : vector<2x32xf32>, vector<32x128xf32>, vector<2x128xf32> -> vector<2x128xf32>
    %96 = arith.addf %20, %95 : vector<2x128xf32>
    %97 = math.tanh %96 : vector<2x128xf32>
    %98 = arith.mulf %97, %33 : vector<2x128xf32>
    %99 = arith.addf %98, %36 : vector<2x128xf32>
    %100 = vector.extract_strided_slice %99 {offsets = [0, 0], sizes = [2, 32], strides = [1, 1]} : vector<2x128xf32> to vector<2x32xf32>
    %101 = vector.extract_strided_slice %99 {offsets = [0, 32], sizes = [2, 32], strides = [1, 1]} : vector<2x128xf32> to vector<2x32xf32>
    %102 = vector.extract_strided_slice %99 {offsets = [0, 64], sizes = [2, 32], strides = [1, 1]} : vector<2x128xf32> to vector<2x32xf32>
    %103 = vector.extract_strided_slice %99 {offsets = [0, 96], sizes = [2, 32], strides = [1, 1]} : vector<2x128xf32> to vector<2x32xf32>
    %104 = arith.mulf %101, %92 : vector<2x32xf32>
    %105 = arith.mulf %100, %102 : vector<2x32xf32>
    %106 = arith.addf %104, %105 : vector<2x32xf32>
    %107 = math.tanh %106 : vector<2x32xf32>
    %108 = arith.mulf %103, %107 : vector<2x32xf32>
    %cst_20 = arith.constant dense<0.000000e+00> : vector<2x128xf32>
    %109 = tpu.matmul %108, %30, %cst_20 {dimension_numbers = #tpu.dot_dimension_numbers<[1], [0], [0], [1], [0, 0, 1, 1], [], []>} : vector<2x32xf32>, vector<32x128xf32>, vector<2x128xf32> -> vector<2x128xf32>
    %110 = arith.addf %23, %109 : vector<2x128xf32>
    %111 = math.tanh %110 : vector<2x128xf32>
    %112 = arith.mulf %111, %33 : vector<2x128xf32>
    %113 = arith.addf %112, %36 : vector<2x128xf32>
    %114 = vector.extract_strided_slice %113 {offsets = [0, 0], sizes = [2, 32], strides = [1, 1]} : vector<2x128xf32> to vector<2x32xf32>
    %115 = vector.extract_strided_slice %113 {offsets = [0, 32], sizes = [2, 32], strides = [1, 1]} : vector<2x128xf32> to vector<2x32xf32>
    %116 = vector.extract_strided_slice %113 {offsets = [0, 64], sizes = [2, 32], strides = [1, 1]} : vector<2x128xf32> to vector<2x32xf32>
    %117 = vector.extract_strided_slice %113 {offsets = [0, 96], sizes = [2, 32], strides = [1, 1]} : vector<2x128xf32> to vector<2x32xf32>
    %118 = arith.mulf %115, %106 : vector<2x32xf32>
    %119 = arith.mulf %114, %116 : vector<2x32xf32>
    %120 = arith.addf %118, %119 : vector<2x32xf32>
    %121 = math.tanh %120 : vector<2x32xf32>
    %122 = arith.mulf %117, %121 : vector<2x32xf32>
    %cst_21 = arith.constant dense<0.000000e+00> : vector<2x128xf32>
    %123 = tpu.matmul %122, %30, %cst_21 {dimension_numbers = #tpu.dot_dimension_numbers<[1], [0], [0], [1], [0, 0, 1, 1], [], []>} : vector<2x32xf32>, vector<32x128xf32>, vector<2x128xf32> -> vector<2x128xf32>
    %124 = arith.addf %26, %123 : vector<2x128xf32>
    %125 = math.tanh %124 : vector<2x128xf32>
    %126 = arith.mulf %125, %33 : vector<2x128xf32>
    %127 = arith.addf %126, %36 : vector<2x128xf32>
    %128 = vector.extract_strided_slice %127 {offsets = [0, 0], sizes = [2, 32], strides = [1, 1]} : vector<2x128xf32> to vector<2x32xf32>
    %129 = vector.extract_strided_slice %127 {offsets = [0, 32], sizes = [2, 32], strides = [1, 1]} : vector<2x128xf32> to vector<2x32xf32>
    %130 = vector.extract_strided_slice %127 {offsets = [0, 64], sizes = [2, 32], strides = [1, 1]} : vector<2x128xf32> to vector<2x32xf32>
    %131 = vector.extract_strided_slice %127 {offsets = [0, 96], sizes = [2, 32], strides = [1, 1]} : vector<2x128xf32> to vector<2x32xf32>
    %132 = arith.mulf %129, %120 : vector<2x32xf32>
    %133 = arith.mulf %128, %130 : vector<2x32xf32>
    %134 = arith.addf %132, %133 : vector<2x32xf32>
    %135 = math.tanh %134 : vector<2x32xf32>
    %136 = arith.mulf %131, %135 : vector<2x32xf32>
    %cst_22 = arith.constant dense<0.000000e+00> : vector<2x128xf32>
    %137 = tpu.matmul %136, %30, %cst_22 {dimension_numbers = #tpu.dot_dimension_numbers<[1], [0], [0], [1], [0, 0, 1, 1], [], []>} : vector<2x32xf32>, vector<32x128xf32>, vector<2x128xf32> -> vector<2x128xf32>
    %138 = arith.addf %29, %137 : vector<2x128xf32>
    %139 = math.tanh %138 : vector<2x128xf32>
    %140 = arith.mulf %139, %33 : vector<2x128xf32>
    %141 = arith.addf %140, %36 : vector<2x128xf32>
    %142 = vector.extract_strided_slice %141 {offsets = [0, 0], sizes = [2, 32], strides = [1, 1]} : vector<2x128xf32> to vector<2x32xf32>
    %143 = vector.extract_strided_slice %141 {offsets = [0, 32], sizes = [2, 32], strides = [1, 1]} : vector<2x128xf32> to vector<2x32xf32>
    %144 = vector.extract_strided_slice %141 {offsets = [0, 64], sizes = [2, 32], strides = [1, 1]} : vector<2x128xf32> to vector<2x32xf32>
    %145 = vector.extract_strided_slice %141 {offsets = [0, 96], sizes = [2, 32], strides = [1, 1]} : vector<2x128xf32> to vector<2x32xf32>
    %146 = arith.mulf %143, %134 : vector<2x32xf32>
    %147 = arith.mulf %142, %144 : vector<2x32xf32>
    %148 = arith.addf %146, %147 : vector<2x32xf32>
    %149 = math.tanh %148 : vector<2x32xf32>
    %150 = arith.mulf %145, %149 : vector<2x32xf32>
    %151 = vector.extract_strided_slice %52 {offsets = [0, 0], sizes = [1, 32], strides = [1, 1]} : vector<2x32xf32> to vector<1x32xf32>
    %152 = vector.extract_strided_slice %66 {offsets = [0, 0], sizes = [1, 32], strides = [1, 1]} : vector<2x32xf32> to vector<1x32xf32>
    %153 = vector.extract_strided_slice %80 {offsets = [0, 0], sizes = [1, 32], strides = [1, 1]} : vector<2x32xf32> to vector<1x32xf32>
    %154 = vector.extract_strided_slice %94 {offsets = [0, 0], sizes = [1, 32], strides = [1, 1]} : vector<2x32xf32> to vector<1x32xf32>
    %155 = vector.extract_strided_slice %108 {offsets = [0, 0], sizes = [1, 32], strides = [1, 1]} : vector<2x32xf32> to vector<1x32xf32>
    %156 = vector.extract_strided_slice %122 {offsets = [0, 0], sizes = [1, 32], strides = [1, 1]} : vector<2x32xf32> to vector<1x32xf32>
    %157 = vector.extract_strided_slice %136 {offsets = [0, 0], sizes = [1, 32], strides = [1, 1]} : vector<2x32xf32> to vector<1x32xf32>
    %158 = vector.extract_strided_slice %150 {offsets = [0, 0], sizes = [1, 32], strides = [1, 1]} : vector<2x32xf32> to vector<1x32xf32>
    %159 = vector.extract_strided_slice %52 {offsets = [1, 0], sizes = [1, 32], strides = [1, 1]} : vector<2x32xf32> to vector<1x32xf32>
    %160 = vector.extract_strided_slice %66 {offsets = [1, 0], sizes = [1, 32], strides = [1, 1]} : vector<2x32xf32> to vector<1x32xf32>
    %161 = vector.extract_strided_slice %80 {offsets = [1, 0], sizes = [1, 32], strides = [1, 1]} : vector<2x32xf32> to vector<1x32xf32>
    %162 = vector.extract_strided_slice %94 {offsets = [1, 0], sizes = [1, 32], strides = [1, 1]} : vector<2x32xf32> to vector<1x32xf32>
    %163 = vector.extract_strided_slice %108 {offsets = [1, 0], sizes = [1, 32], strides = [1, 1]} : vector<2x32xf32> to vector<1x32xf32>
    %164 = vector.extract_strided_slice %122 {offsets = [1, 0], sizes = [1, 32], strides = [1, 1]} : vector<2x32xf32> to vector<1x32xf32>
    %165 = vector.extract_strided_slice %136 {offsets = [1, 0], sizes = [1, 32], strides = [1, 1]} : vector<2x32xf32> to vector<1x32xf32>
    %166 = vector.extract_strided_slice %150 {offsets = [1, 0], sizes = [1, 32], strides = [1, 1]} : vector<2x32xf32> to vector<1x32xf32>
    %167 = tpu.concatenate %151, %152, %153, %154, %155, %156, %157, %158, %159, %160, %161, %162, %163, %164, %165, %166 in 0 : vector<1x32xf32>, vector<1x32xf32>, vector<1x32xf32>, vector<1x32xf32>, vector<1x32xf32>, vector<1x32xf32>, vector<1x32xf32>, vector<1x32xf32>, vector<1x32xf32>, vector<1x32xf32>, vector<1x32xf32>, vector<1x32xf32>, vector<1x32xf32>, vector<1x32xf32>, vector<1x32xf32>, vector<1x32xf32> -> vector<16x32xf32>
    %c0_23 = arith.constant 0 : index
    %c0_24 = arith.constant 0 : index
    %168 = vector.load %arg6[%c0_23, %c0_24] : memref<32x24xf32, #tpu.memory_space<vmem>>, vector<32x24xf32>
    %cst_25 = arith.constant dense<0.000000e+00> : vector<16x24xf32>
    %169 = tpu.matmul %167, %168, %cst_25 {dimension_numbers = #tpu.dot_dimension_numbers<[1], [0], [0], [1], [0, 0, 1, 1], [], []>} : vector<16x32xf32>, vector<32x24xf32>, vector<16x24xf32> -> vector<16x24xf32>
    %c0_26 = arith.constant 0 : index
    %c0_27 = arith.constant 0 : index
    %170 = vector.load %arg7[%c0_26, %c0_27] : memref<1x24xf32, #tpu.memory_space<vmem>>, vector<1x24xf32>
    %171 = vector.broadcast %170 : vector<1x24xf32> to vector<16x24xf32>
    %172 = arith.addf %169, %171 : vector<16x24xf32>
    %c0_28 = arith.constant 0 : index
    %c0_29 = arith.constant 0 : index
    %173 = vector.load %arg10[%c0_28, %c0_29] : memref<16x24xf32, #tpu.memory_space<vmem>>, vector<16x24xf32>
    tpu.vector_store %arg10[%c0_28, %c0_29], %172 {strides = array<i32>} : memref<16x24xf32, #tpu.memory_space<vmem>>, vector<16x24xf32>,
    %c0_30 = arith.constant 0 : index
    %c0_31 = arith.constant 0 : index
    %174 = vector.load %arg11[%c0_30, %c0_31] : memref<2x32xf32, #tpu.memory_space<vmem>>, vector<2x32xf32>
    tpu.vector_store %arg11[%c0_30, %c0_31], %150 {strides = array<i32>} : memref<2x32xf32, #tpu.memory_space<vmem>>, vector<2x32xf32>,
    %c0_32 = arith.constant 0 : index
    %c0_33 = arith.constant 0 : index
    %175 = vector.load %arg12[%c0_32, %c0_33] : memref<2x32xf32, #tpu.memory_space<vmem>>, vector<2x32xf32>
    tpu.vector_store %arg12[%c0_32, %c0_33], %148 {strides = array<i32>} : memref<2x32xf32, #tpu.memory_space<vmem>>, vector<2x32xf32>,
    return
  }
}

</mosaic_0001>

<bundles_post_ra>
// kernel: network88_forward.1
= control target key start
LH: loop header
LB: loop body
LE: loop exit
PB: predicated region body
PF: predicated region fallthrough
CT: control target
= control target key end

     0   :  { %18 = vsyncpa [#allocation3], 0  ;;  %vm50_vm0 = vcmask 64512   ;;  %v1465_v6 = vmov 0.0|0.0   ;;  %s1769_s0 = inlined_call_operand.vmem [shape: f32[16,8], index: 0, kind: input, shape index: {}]   ;;  %s1770_s1 = inlined_call_operand.vmem [shape: f32[8,128], index: 1, kind: input, shape index: {}]   ;;  %s1771_s2 = inlined_call_operand.vmem [shape: f32[32,128], index: 2, kind: input, shape index: {}]   ;;  %s1772_s3 = inlined_call_operand.vmem [shape: f32[1,128], index: 3, kind: input, shape index: {}]   ;;  %s1773_s4 = inlined_call_operand.vmem [shape: f32[1,128], index: 4, kind: input, shape index: {}]   ;;  %s1774_s5 = inlined_call_operand.vmem [shape: f32[1,128], index: 5, kind: input, shape index: {}]   ;;  %s1775_s6 = inlined_call_operand.vmem [shape: f32[32,24], index: 6, kind: input, shape index: {}]   ;;  %s1776_s7 = inlined_call_operand.vmem [shape: f32[1,24], index: 7, kind: input, shape index: {}]   ;;  %s1777_s8 = inlined_call_operand.vmem [shape: f32[2,32], index: 8, kind: input, shape index: {}]   ;;  %s1778_s9 = inlined_call_operand.vmem [shape: f32[2,32], index: 9, kind: input, shape index: {}]   ;;  %s1779_s10 = inlined_call_operand.vmem [shape: f32[16,24], index: 10, kind: output, shape index: {0}]   ;;  %s1780_s11 = inlined_call_operand.hbm [shape: f32[2,32], index: 11, kind: output, shape index: {1}]   ;;  %s1781_s12 = inlined_call_operand.hbm [shape: f32[2,32], index: 12, kind: output, shape index: {2}]  }
   0x1   :  { %v42_v0 = vld [vmem:[%s1770_s1] sm:$0xff]  ;;  %v41_v2 = vld [vmem:[%s1769_s0 + $0x8] sm:$0xff]  ;;  %v173_v5 = vld [vmem:[%s1771_s2 + $0x10] sm:$0xff]  ;;  %1321 = vmatprep.subr.bf16.mxu1 %v1465_v6 }
   0x2   :  { %v40_v1 = vld [vmem:[%s1769_s0] sm:$0xff]  ;;  %1217 = vmatprep.subr.mxu0 %v42_v0  ;;  %v172_v4 = vld [vmem:[%s1771_s2 + $0x8] sm:$0xff]  ;;  %v174_v8 = vld [vmem:[%s1771_s2 + $0x18] sm:$0xff] }
   0x3   :  { %1219 = vmatprep.mubr.msk.f32.mxu0 %vm50_vm0, %v40_v1  ;;  %v171_v3 = vld [vmem:[%s1771_s2] sm:$0xff]  ;;  %1218 = vmatpush3.msra.mxu0 %v42_v0 }
   0x4   :  { %v1557_v7 = vpack.c.bf16 %v172_v4, %v171_v3 }
   0x5   :  { %19 = vsyncpa [#allocation5], 0  ;;  %1220 = vmatmul.mubr.msk.f32.vlgmr.msra.gmra.mrb[0].mxu0 %vm50_vm0, %v41_v2  ;;  %vm1466_vm1 = vmmov 0   ;;  %v1467_v9 = vmov 0.0   ;;  %v1565_v10 = vpack.c.bf16 %v174_v8, %v173_v5  ;;  %1327 = vmatprep.subr.bf16.mxu0 %v1465_v6  ;;  %v189_v11 = vld [vmem:[%s1777_s8] sm:$0x3] }
   0x6   :  { %1230 = vmatprep.mubr.msk.f32.mxu1 %vm1466_vm1, %v1467_v9  ;;  %1323 = vmatpush3.bf16.msra.mxu1 %v1557_v7  ;;  %vm191_vm2 = vcmask 261120   ;;  %v1152_v12 = vld [vmem:[%s1772_s3] ss:$0 sm:$0xff]  ;;  %vm135_vm3 = vcmask 1040384   ;;  %s1468_s20 = smov 64   ;;  %s1469_s23 = smov 32  }
   0x7   :  { %1324 = vmatprep.subr.bf16.mxu1 %v1465_v6  ;;  %1329 = vmatpush3.bf16.msra.mxu0 %v1557_v7  ;;  %v1613_v42 = vld [vmem:[%s1773_s4] ss:$0 sm:$0xff]  ;;  %vm992_vm4 = vcmask 1041408   ;;  %vm994_vm5 = vcmask 1042432   ;;  %vm996_vm6 = vcmask 1043456   ;;  %vm998_vm7 = vcmask 1044480  }
   0x8   :  { %1330 = vmatprep.subr.bf16.mxu0 %v1465_v6  ;;  %1241 = vmatprep.mubr.msk.f32.mxu0 %vm1466_vm1, %v1467_v9  ;;  %v1618_v44 = vld [vmem:[%s1774_s5] ss:$0 sm:$0xff]  ;;  %vm1000_vm8 = vcmask 1045504   ;;  %vm1002_vm9 = vcmask 1046528   ;;  %vm1113_vm10 = vcmask 254976   ;;  %s1471_s29 = smov [#allocation2]  }
   0x9   :  { %v190_v47 = vld [vmem:[%s1778_s9] sm:$0x3]  ;;  %s1128_s30 = sshll.u32 %s1471_s29, 4  ;;  %s1472_s1 = smov [#allocation4]   ;;  %s1129_s30 = int_to_ptr.vmem [resolvable:$true] %s1128_s30 }
   0xa   :  { %1326 = vmatpush3.bf16.msra.mxu1 %v1565_v10  ;;  %s1138_s13 = sshll.u32 %s1472_s1, 4  ;;  %s1417_s0 = scalar_lea.vmem %s1129_s30, 32  ;;  %s1139_s13 = int_to_ptr.vmem [resolvable:$true] %s1138_s13 }
   0xb   :  { %1332 = vmatpush3.bf16.msra.mxu0 %v1565_v10  ;;  %1333 = vmatprep.subr.bf16.mxu1 %v1465_v6  ;;  %p1418_p0 = scmp.ne.s32.totalorder %s1129_s30, %s1417_s0  ;;  %p1422_p1 = scmp.lt.s32.totalorder %s1129_s30, %s1129_s30 }
   0xc   :  { %1339 = vmatprep.subr.bf16.mxu0 %v1465_v6  ;;  %p1423_p2 = scmp.lt.s32.totalorder %s1417_s0, %s1417_s0 }
   0xd   :  { %1231 = vmatmul.mubr.msk.f32.vlgmr.msra.gmra.mrb[0].mxu1 %vm191_vm2, %v189_v11 }
   0xe   :  { %1335 = vmatpush3.bf16.msra.mxu1 %v1557_v7  ;;  %1252 = vmatprep.mubr.msk.f32.mxu1 %vm1466_vm1, %v1467_v9  ;;  %p1424_p3 = por %p1423_p2, %p1422_p1 }
   0xf   :  { %1336 = vmatprep.subr.bf16.mxu1 %v1465_v6 }
  0x10   :  { %p1425_p4 = pnand %p1424_p3, %p1418_p0 }
  0x12   :  { %1338 = vmatpush3.bf16.msra.mxu1 %v1565_v10 }
  0x13   :  { %1345 = vmatprep.subr.bf16.mxu1 %v1465_v6 }
  0xd8   :  { %v1221_v13 = vpop.f32.mrb[0].mxu0 }
  0xd9   :  { %v129_v14 = vadd.f32 %v1221_v13, %v1152_v12  ;;  %v123_v15 = vpop.f32.mrb[1].mxu0 }
  0xda   :  { %v124_v16 = vadd.f32 %v1152_v12, %v123_v15 }
  0xdb   :  { %v133_v17 = vrot.slane %v129_v14, 7  ;;  %v143_v18 = vrot.slane %v129_v14, 1  ;;  %v148_v19 = vrot.slane %v129_v14, 2  ;;  %v153_v20 = vrot.slane %v129_v14, 3 }
  0xdc   :  { %v138_v21 = vrot.slane %v124_v16, 1  ;;  %v141_v22 = vrot.slane %v124_v16, 2  ;;  %v146_v23 = vrot.slane %v124_v16, 3  ;;  %v151_v24 = vrot.slane %v124_v16, 4 }
  0xdd   :  { %v136_v25 = vsel %vm135_vm3, %v124_v16, %v133_v17  ;;  %v156_v26 = vrot.slane %v124_v16, 5  ;;  %v158_v27 = vrot.slane %v129_v14, 4  ;;  %v161_v28 = vrot.slane %v124_v16, 6 }
  0xde   :  { %v140_v29 = vsel %vm135_vm3, %v138_v21, %v129_v14  ;;  %v1593_v30 = vsel %vm135_vm3, %v141_v22, %v143_v18  ;;  %v1596_v31 = vsel %vm135_vm3, %v146_v23, %v148_v19  ;;  %v1599_v32 = vsel %vm135_vm3, %v151_v24, %v153_v20 }
  0xdf   :  { %v1602_v33 = vsel %vm135_vm3, %v156_v26, %v158_v27  ;;  %v163_v34 = vrot.slane %v129_v14, 5  ;;  %v166_v35 = vrot.slane %v124_v16, 7  ;;  %v168_v36 = vrot.slane %v129_v14, 6 }
  0xe0   :  { %v261_v37 = vpop.f32.mrb[0].mxu1 }
  0xe1   :  { %v265_v38 = vadd.f32 %v261_v37, %v136_v25  ;;  %v1232_v39 = vpop.f32.mrb[1].mxu1  ;;  %v1605_v40 = vsel %vm135_vm3, %v161_v28, %v163_v34  ;;  %v1608_v41 = vsel %vm135_vm3, %v166_v35, %v168_v36 }
  0xe3   :  { %1385 = vtanh.f32 %v265_v38 }
  0xed   :  { %v1386_v43 = vpop.eup %1385 }
  0xee   :  { %v267_v45 = vmul.f32 %v1386_v43, %v1613_v42 }
  0xf0   :  { %v268_v46 = vadd.f32 %v1618_v44, %v267_v45 }
  0xf2   :  { %275 = vrot.lane.b32.xlu0 %v268_v46, %s1468_s20 }
  0xf6   :  { %270 = vrot.lane.b32.xlu0 %v190_v47, %s1469_s23 }
 0x164   :  { %v276_v48 = vpop.permute.xlu0 %275 }
 0x165   :  { %v278_v49 = vmul.f32 %v276_v48, %v268_v46 }
 0x167   :  { %280 = vrot.lane.b32.xlu1 %v278_v49, %s1469_s23 }
 0x168   :  { %v271_v50 = vpop.permute.xlu0 %270 }
 0x169   :  { %v273_v51 = vmul.f32 %v271_v50, %v268_v46 }
 0x1d9   :  { %v281_v52 = vpop.permute.xlu1 %280 }
 0x1da   :  { %v283_v53 = vadd.f32 %v281_v52, %v273_v51 }
 0x1dc   :  { %1387 = vtanh.f32 %v283_v53 }
 0x1e6   :  { %v1388_v54 = vpop.eup %1387 }
 0x1e7   :  { %286 = vrot.lane.b32.xlu1 %v1388_v54, %s1468_s20 }
 0x259   :  { %v287_v55 = vpop.permute.xlu1 %286 }
 0x25a   :  { %v1629_v56 = vmul.f32 %v287_v55, %v268_v46 }
 0x25c   :  { %291 = vrot.lane.b32.xlu0 %v1629_v56, %s1469_s23  ;;  %v977_v28 = vrot.slane %v1629_v56, 1 }
 0x2ce   :  { %v292_v57 = vpop.permute.xlu0 %291 }
 0x2cf   :  { %1242 = vmatmul.mubr.msk.f32.vlgmr.msra.gmra.mrb[2].mxu0 %vm191_vm2, %v292_v57 }
 0x2d0   :  { %1341 = vmatpush3.bf16.msra.mxu0 %v1557_v7  ;;  %1263 = vmatprep.mubr.msk.f32.mxu0 %vm1466_vm1, %v1467_v9 }
 0x2d1   :  { %1342 = vmatprep.subr.bf16.mxu0 %v1465_v6 }
 0x2d4   :  { %1344 = vmatpush3.bf16.msra.mxu0 %v1565_v10 }
 0x2d5   :  { %1351 = vmatprep.subr.bf16.mxu0 %v1465_v6 }
 0x3a2   :  { %v361_v58 = vpop.f32.mrb[2].mxu0 }
 0x3a3   :  { %v365_v59 = vadd.f32 %v361_v58, %v140_v29  ;;  %v1243_v60 = vpop.f32.mrb[3].mxu0 }
 0x3a5   :  { %1389 = vtanh.f32 %v365_v59 }
 0x3af   :  { %v1390_v61 = vpop.eup %1389 }
 0x3b0   :  { %v367_v62 = vmul.f32 %v1390_v61, %v1613_v42 }
 0x3b2   :  { %v368_v63 = vadd.f32 %v1618_v44, %v367_v62 }
 0x3b4   :  { %371 = vrot.lane.b32.xlu1 %v368_v63, %s1468_s20  ;;  %v369_v2 = vmul.f32 %v368_v63, %v283_v53 }
 0x426   :  { %v372_v0 = vpop.permute.xlu1 %371 }
 0x427   :  { %v374_v1 = vmul.f32 %v372_v0, %v368_v63 }
 0x429   :  { %376 = vrot.lane.b32.xlu0 %v374_v1, %s1469_s23 }
 0x49b   :  { %v377_v3 = vpop.permute.xlu0 %376 }
 0x49c   :  { %v379_v4 = vadd.f32 %v377_v3, %v369_v2 }
 0x49e   :  { %1391 = vtanh.f32 %v379_v4 }
 0x4a8   :  { %v1392_v5 = vpop.eup %1391 }
 0x4a9   :  { %382 = vrot.lane.b32.xlu1 %v1392_v5, %s1468_s20 }
 0x51b   :  { %v383_v8 = vpop.permute.xlu1 %382 }
 0x51c   :  { %v385_v11 = vmul.f32 %v383_v8, %v368_v63 }
 0x51e   :  { %387 = vrot.lane.b32.xlu0 %v385_v11, %s1469_s23  ;;  %v962_v25 = vrot.slane %v385_v11, 7  ;;  %v1004_v35 = vsel %vm135_vm3, %v977_v28, %v385_v11 }
 0x520   :  { %v991_v34 = vsel %vm135_vm3, %v1629_v56, %v962_v25 }
 0x590   :  { %v388_v12 = vpop.permute.xlu0 %387 }
 0x591   :  { %1253 = vmatmul.mubr.msk.f32.vlgmr.msra.gmra.mrb[2].mxu1 %vm191_vm2, %v388_v12 }
 0x592   :  { %1347 = vmatpush3.bf16.msra.mxu1 %v1557_v7  ;;  %1274 = vmatprep.mubr.msk.f32.mxu1 %vm1466_vm1, %v1467_v9 }
 0x593   :  { %1348 = vmatprep.subr.bf16.mxu1 %v1465_v6 }
 0x596   :  { %1350 = vmatpush3.bf16.msra.mxu1 %v1565_v10 }
 0x597   :  { %1357 = vmatprep.subr.bf16.mxu1 %v1465_v6 }
 0x664   :  { %v457_v13 = vpop.f32.mrb[2].mxu1 }
 0x665   :  { %v461_v14 = vadd.f32 %v457_v13, %v1593_v30  ;;  %v1254_v15 = vpop.f32.mrb[3].mxu1 }
 0x667   :  { %1393 = vtanh.f32 %v461_v14 }
 0x671   :  { %v1394_v16 = vpop.eup %1393 }
 0x672   :  { %v463_v17 = vmul.f32 %v1394_v16, %v1613_v42 }
 0x674   :  { %v464_v18 = vadd.f32 %v1618_v44, %v463_v17 }
 0x676   :  { %467 = vrot.lane.b32.xlu1 %v464_v18, %s1468_s20  ;;  %v465_v21 = vmul.f32 %v464_v18, %v379_v4 }
 0x6e8   :  { %v468_v19 = vpop.permute.xlu1 %467 }
 0x6e9   :  { %v470_v20 = vmul.f32 %v468_v19, %v464_v18 }
 0x6eb   :  { %472 = vrot.lane.b32.xlu0 %v470_v20, %s1469_s23 }
 0x75d   :  { %v473_v22 = vpop.permute.xlu0 %472 }
 0x75e   :  { %v475_v23 = vadd.f32 %v473_v22, %v465_v21 }
 0x760   :  { %1395 = vtanh.f32 %v475_v23 }
 0x76a   :  { %v1396_v24 = vpop.eup %1395 }
 0x76b   :  { %478 = vrot.lane.b32.xlu1 %v1396_v24, %s1468_s20 }
 0x7dd   :  { %v479_v26 = vpop.permute.xlu1 %478 }
 0x7de   :  { %v481_v27 = vmul.f32 %v479_v26, %v464_v18 }
 0x7e0   :  { %v964_v29 = vrot.slane %v481_v27, 6  ;;  %v979_v30 = vrot.slane %v481_v27, 7  ;;  %483 = vrot.lane.b32.xlu0 %v481_v27, %s1469_s23 }
 0x7e2   :  { %v993_v36 = vsel %vm992_vm4, %v991_v34, %v964_v29  ;;  %v1005_v37 = vsel %vm992_vm4, %v1004_v35, %v979_v30 }
 0x852   :  { %v484_v38 = vpop.permute.xlu0 %483 }
 0x853   :  { %1264 = vmatmul.mubr.msk.f32.vlgmr.msra.gmra.mrb[4].mxu0 %vm191_vm2, %v484_v38 }
 0x854   :  { %1353 = vmatpush3.bf16.msra.mxu0 %v1557_v7  ;;  %1285 = vmatprep.mubr.msk.f32.mxu0 %vm1466_vm1, %v1467_v9 }
 0x855   :  { %1354 = vmatprep.subr.bf16.mxu0 %v1465_v6 }
 0x858   :  { %1356 = vmatpush3.bf16.msra.mxu0 %v1565_v10 }
 0x859   :  { %1363 = vmatprep.subr.bf16.mxu0 %v1465_v6 }
 0x926   :  { %v553_v39 = vpop.f32.mrb[4].mxu0 }
 0x927   :  { %v557_v43 = vadd.f32 %v553_v39, %v1596_v31  ;;  %v1265_v45 = vpop.f32.mrb[5].mxu0 }
 0x929   :  { %1397 = vtanh.f32 %v557_v43 }
 0x933   :  { %v1398_v46 = vpop.eup %1397 }
 0x934   :  { %v559_v47 = vmul.f32 %v1398_v46, %v1613_v42 }
 0x936   :  { %v560_v48 = vadd.f32 %v1618_v44, %v559_v47 }
 0x938   :  { %563 = vrot.lane.b32.xlu1 %v560_v48, %s1468_s20  ;;  %v561_v51 = vmul.f32 %v560_v48, %v475_v23 }
 0x9aa   :  { %v564_v49 = vpop.permute.xlu1 %563 }
 0x9ab   :  { %v566_v50 = vmul.f32 %v564_v49, %v560_v48 }
 0x9ad   :  { %568 = vrot.lane.b32.xlu0 %v566_v50, %s1469_s23 }
 0xa1f   :  { %v569_v52 = vpop.permute.xlu0 %568 }
 0xa20   :  { %v571_v53 = vadd.f32 %v569_v52, %v561_v51 }
 0xa22   :  { %1399 = vtanh.f32 %v571_v53 }
 0xa2c   :  { %v1400_v54 = vpop.eup %1399 }
 0xa2d   :  { %574 = vrot.lane.b32.xlu1 %v1400_v54, %s1468_s20 }
 0xa9f   :  { %v575_v31 = vpop.permute.xlu1 %574 }
 0xaa0   :  { %v577_v55 = vmul.f32 %v575_v31, %v560_v48 }
 0xaa2   :  { %v966_v56 = vrot.slane %v577_v55, 5  ;;  %v981_v57 = vrot.slane %v577_v55, 6  ;;  %579 = vrot.lane.b32.xlu0 %v577_v55, %s1469_s23 }
 0xaa4   :  { %v995_v58 = vsel %vm994_vm5, %v993_v36, %v966_v56  ;;  %v1006_v59 = vsel %vm994_vm5, %v1005_v37, %v981_v57 }
 0xb14   :  { %v580_v60 = vpop.permute.xlu0 %579 }
 0xb15   :  { %1275 = vmatmul.mubr.msk.f32.vlgmr.msra.gmra.mrb[4].mxu1 %vm191_vm2, %v580_v60 }
 0xb16   :  { %1359 = vmatpush3.bf16.msra.mxu1 %v1557_v7  ;;  %1296 = vmatprep.mubr.msk.f32.mxu1 %vm1466_vm1, %v1467_v9 }
 0xb17   :  { %1360 = vmatprep.subr.bf16.mxu1 %v1465_v6 }
 0xb1a   :  { %1362 = vmatpush3.bf16.msra.mxu1 %v1565_v10 }
 0xbe8   :  { %v649_v61 = vpop.f32.mrb[4].mxu1 }
 0xbe9   :  { %v653_v62 = vadd.f32 %v649_v61, %v1599_v32  ;;  %v1276_v63 = vpop.f32.mrb[5].mxu1 }
 0xbeb   :  { %1401 = vtanh.f32 %v653_v62 }
 0xbf5   :  { %v1402_v0 = vpop.eup %1401 }
 0xbf6   :  { %v655_v1 = vmul.f32 %v1402_v0, %v1613_v42 }
 0xbf8   :  { %v656_v2 = vadd.f32 %v1618_v44, %v655_v1 }
 0xbfa   :  { %659 = vrot.lane.b32.xlu1 %v656_v2, %s1468_s20  ;;  %v657_v5 = vmul.f32 %v656_v2, %v571_v53 }
 0xc6c   :  { %v660_v3 = vpop.permute.xlu1 %659 }
 0xc6d   :  { %v662_v4 = vmul.f32 %v660_v3, %v656_v2 }
 0xc6f   :  { %664 = vrot.lane.b32.xlu0 %v662_v4, %s1469_s23 }
 0xce1   :  { %v665_v8 = vpop.permute.xlu0 %664 }
 0xce2   :  { %v667_v11 = vadd.f32 %v665_v8, %v657_v5  ;;  %v1014_v5 = vld [vmem:[%s1775_s6 + $0x18] sm:$0xff] }
 0xce4   :  { %1403 = vtanh.f32 %v667_v11 }
 0xcee   :  { %v1404_v12 = vpop.eup %1403 }
 0xcef   :  { %670 = vrot.lane.b32.xlu1 %v1404_v12, %s1468_s20 }
 0xd61   :  { %v671_v32 = vpop.permute.xlu1 %670 }
 0xd62   :  { %v673_v13 = vmul.f32 %v671_v32, %v656_v2 }
 0xd64   :  { %v968_v14 = vrot.slane %v673_v13, 4  ;;  %v983_v15 = vrot.slane %v673_v13, 5  ;;  %675 = vrot.lane.b32.xlu0 %v673_v13, %s1469_s23 }
 0xd66   :  { %v997_v16 = vsel %vm996_vm6, %v995_v58, %v968_v14  ;;  %v1007_v17 = vsel %vm996_vm6, %v1006_v59, %v983_v15 }
 0xdd6   :  { %v676_v18 = vpop.permute.xlu0 %675 }
 0xdd7   :  { %1286 = vmatmul.mubr.msk.f32.vlgmr.msra.gmra.mrb[6].mxu0 %vm191_vm2, %v676_v18 }
 0xdd8   :  { %1365 = vmatpush3.bf16.msra.mxu0 %v1557_v7  ;;  %1307 = vmatprep.mubr.msk.f32.mxu0 %vm1466_vm1, %v1467_v9 }
 0xdd9   :  { %1366 = vmatprep.subr.bf16.mxu0 %v1465_v6 }
 0xddc   :  { %1368 = vmatpush3.bf16.msra.mxu0 %v1565_v10 }
 0xeaa   :  { %v745_v19 = vpop.f32.mrb[6].mxu0 }
 0xeab   :  { %v749_v20 = vadd.f32 %v745_v19, %v1602_v33  ;;  %v1287_v21 = vpop.f32.mrb[7].mxu0 }
 0xead   :  { %1405 = vtanh.f32 %v749_v20 }
 0xeb7   :  { %v1406_v22 = vpop.eup %1405 }
 0xeb8   :  { %v751_v23 = vmul.f32 %v1406_v22, %v1613_v42 }
 0xeba   :  { %v752_v24 = vadd.f32 %v1618_v44, %v751_v23 }
 0xebc   :  { %755 = vrot.lane.b32.xlu1 %v752_v24, %s1468_s20  ;;  %v753_v9 = vmul.f32 %v752_v24, %v667_v11 }
 0xf2e   :  { %v756_v7 = vpop.permute.xlu1 %755 }
 0xf2f   :  { %v758_v25 = vmul.f32 %v756_v7, %v752_v24 }
 0xf31   :  { %760 = vrot.lane.b32.xlu0 %v758_v25, %s1469_s23 }
 0xfa3   :  { %v761_v6 = vpop.permute.xlu0 %760 }
 0xfa4   :  { %v763_v26 = vadd.f32 %v761_v6, %v753_v9 }
 0xfa6   :  { %1407 = vtanh.f32 %v763_v26 }
 0xfb0   :  { %v1408_v10 = vpop.eup %1407 }
 0xfb1   :  { %766 = vrot.lane.b32.xlu1 %v1408_v10, %s1468_s20 }
0x1023   :  { %v767_v33 = vpop.permute.xlu1 %766 }
0x1024   :  { %v769_v27 = vmul.f32 %v767_v33, %v752_v24 }
0x1026   :  { %v970_v28 = vrot.slane %v769_v27, 3  ;;  %v985_v29 = vrot.slane %v769_v27, 4  ;;  %771 = vrot.lane.b32.xlu0 %v769_v27, %s1469_s23 }
0x1028   :  { %v999_v30 = vsel %vm998_vm7, %v997_v16, %v970_v28  ;;  %v1008_v34 = vsel %vm998_vm7, %v1007_v17, %v985_v29 }
0x1098   :  { %v772_v35 = vpop.permute.xlu0 %771 }
0x1099   :  { %1297 = vmatmul.mubr.msk.f32.vlgmr.msra.gmra.mrb[6].mxu1 %vm191_vm2, %v772_v35 }
0x116c   :  { %v841_v36 = vpop.f32.mrb[6].mxu1 }
0x116d   :  { %v845_v37 = vadd.f32 %v841_v36, %v1605_v40  ;;  %v1298_v38 = vpop.f32.mrb[7].mxu1 }
0x116f   :  { %1409 = vtanh.f32 %v845_v37 }
0x1179   :  { %v1410_v39 = vpop.eup %1409 }
0x117a   :  { %v847_v43 = vmul.f32 %v1410_v39, %v1613_v42 }
0x117c   :  { %v848_v45 = vadd.f32 %v1618_v44, %v847_v43 }
0x117e   :  { %851 = vrot.lane.b32.xlu1 %v848_v45, %s1468_s20  ;;  %v849_v48 = vmul.f32 %v848_v45, %v763_v26 }
0x11f0   :  { %v852_v46 = vpop.permute.xlu1 %851 }
0x11f1   :  { %v854_v47 = vmul.f32 %v852_v46, %v848_v45 }
0x11f3   :  { %856 = vrot.lane.b32.xlu0 %v854_v47, %s1469_s23 }
0x1265   :  { %v857_v49 = vpop.permute.xlu0 %856 }
0x1266   :  { %v859_v50 = vadd.f32 %v857_v49, %v849_v48 }
0x1268   :  { %1411 = vtanh.f32 %v859_v50 }
0x1272   :  { %v1412_v51 = vpop.eup %1411 }
0x1273   :  { %862 = vrot.lane.b32.xlu1 %v1412_v51, %s1468_s20 }
0x12e5   :  { %v863_v40 = vpop.permute.xlu1 %862 }
0x12e6   :  { %v865_v52 = vmul.f32 %v863_v40, %v848_v45 }
0x12e8   :  { %v972_v53 = vrot.slane %v865_v52, 2  ;;  %v987_v54 = vrot.slane %v865_v52, 3  ;;  %867 = vrot.lane.b32.xlu0 %v865_v52, %s1469_s23 }
0x12ea   :  { %v1001_v31 = vsel %vm1000_vm8, %v999_v30, %v972_v53  ;;  %v1009_v55 = vsel %vm1000_vm8, %v1008_v34, %v987_v54 }
0x135a   :  { %v868_v56 = vpop.permute.xlu0 %867 }
0x135b   :  { %1308 = vmatmul.mubr.msk.f32.vlgmr.msra.gmra.mrb[8].mxu0 %vm191_vm2, %v868_v56 }
0x142e   :  { %v937_v57 = vpop.f32.mrb[8].mxu0 }
0x142f   :  { %v941_v58 = vadd.f32 %v937_v57, %v1608_v41  ;;  %v1309_v59 = vpop.f32.mrb[9].mxu0  ;;  %v1011_v41 = vld [vmem:[%s1775_s6] sm:$0xff] }
0x1431   :  { %1413 = vtanh.f32 %v941_v58 }
0x143b   :  { %v1414_v60 = vpop.eup %1413 }
0x143c   :  { %v943_v61 = vmul.f32 %v1414_v60, %v1613_v42  ;;  %v1012_v42 = vld [vmem:[%s1775_s6 + $0x8] sm:$0xff] }
0x143d   :  { %v1369_v4 = vpack.c.bf16 %v1012_v42, %v1011_v41 }
0x143e   :  { %v944_v62 = vadd.f32 %v1618_v44, %v943_v61  ;;  %v1013_v44 = vld [vmem:[%s1775_s6 + $0x10] sm:$0xff]  ;;  %s1470_s6 = smov 96  }
0x143f   :  { %v1373_v8 = vpack.c.bf16 %v1014_v5, %v1013_v44  ;;  %1370 = vmatprep.subr.bf16.mxu1 %v1369_v4 }
0x1440   :  { %947 = vrot.lane.b32.xlu1 %v944_v62, %s1468_s20  ;;  %v945_v1 = vmul.f32 %v944_v62, %v859_v50  ;;  %1372 = vmatpush3.bf16.msra.mxu1 %v1369_v4 }
0x1441   :  { %1374 = vmatprep.subr.bf16.mxu1 %v1373_v8 }
0x1444   :  { %1376 = vmatpush3.bf16.msra.mxu1 %v1373_v8 }
0x14b2   :  { %v948_v63 = vpop.permute.xlu1 %947 }
0x14b3   :  { %v950_v0 = vmul.f32 %v948_v63, %v944_v62 }
0x14b5   :  { %952 = vrot.lane.b32.xlu0 %v950_v0, %s1469_s23 }
0x1527   :  { %v953_v2 = vpop.permute.xlu0 %952 }
0x1528   :  { %v955_v3 = vadd.f32 %v953_v2, %v945_v1 }
0x152a   :  { %1415 = vtanh.f32 %v955_v3 }
0x1534   :  { %v1416_v11 = vpop.eup %1415 }
0x1535   :  { %958 = vrot.lane.b32.xlu1 %v1416_v11, %s1468_s20 }
0x15a7   :  { %v959_v12 = vpop.permute.xlu1 %958 }
0x15a8   :  { %v961_v32 = vmul.f32 %v959_v12, %v944_v62 }
0x15aa   :  { %v975_v13 = vrot.slane %v961_v32, 1  ;;  %v989_v14 = vrot.slane %v961_v32, 2 }
0x15ac   :  { %v1003_v15 = vsel %vm1002_vm9, %v1001_v31, %v975_v13  ;;  %v1010_v16 = vsel %vm1002_vm9, %v1009_v55, %v989_v14 }
0x15ad   :  { %1024 = vrot.lane.b32.xlu0 %v1003_v15, %s1469_s23  ;;  %1026 = vrot.lane.b32.xlu1 %v1010_v16, %s1469_s23 }
0x15b1   :  { %1110 = vrot.lane.b32.xlu0 %v961_v32, %s1469_s23  ;;  %1116 = vrot.lane.b32.xlu1 %v955_v3, %s1470_s6 }
0x161f   :  { %v1025_v17 = vpop.permute.xlu0 %1024  ;;  %v1027_v18 = vpop.permute.xlu1 %1026 }
0x1620   :  { %1318 = vmatprep.mubr.msk.f32.mxu1 %vm191_vm2, %v1025_v17 }
0x1621   :  { %1319 = vmatmul.mubr.msk.f32.vlgmr.msra.gmra.mrb[8].mxu1 %vm191_vm2, %v1027_v18 }
0x1623   :  { %v1111_v19 = vpop.permute.xlu0 %1110  ;;  %v1117_v20 = vpop.permute.xlu1 %1116 }
0x1624   :  { %1119 = vst.msk [vmem:[#allocation4] sm:$0x3] %vm1113_vm10, %v1117_v20  ;;  %1114 = vst.msk [vmem:[#allocation2] sm:$0x3] %vm1113_vm10, %v1111_v19 }
0x1625   :  { %1428 = shalt.err (!%p1425_p4)
}
0x1626   :  { %s1429_s15 = scalar_lea.hbm %s1780_s11, 32 }
0x1627   :  { %p1430_p5 = scmp.ne.s32.totalorder %s1780_s11, %s1429_s15  ;;  %p1433_p6 = scmp.lt.u32.totalorder %s1429_s15, %s1780_s11 }
0x1629   :  { %p1435_p7 = pnand %p1433_p6, %p1430_p5 }
0x162b   :  { %1438 = shalt.err (!%p1435_p7)
}
0x162c   :  { %1131 = dma.vmem_to_hbm [thread:$0]  %s1129_s30, 32, %s1780_s11, [#allocation3]  }
0x162d   :  { %s1439_s20 = scalar_lea.vmem %s1139_s13, 32  ;;  %p1444_p9 = scmp.lt.s32.totalorder %s1139_s13, %s1139_s13 }
0x162e   :  { %p1440_p8 = scmp.ne.s32.totalorder %s1139_s13, %s1439_s20  ;;  %p1445_p10 = scmp.lt.s32.totalorder %s1439_s20, %s1439_s20 }
0x1630   :  { %p1446_p11 = por %p1445_p10, %p1444_p9 }
0x1632   :  { %p1447_p12 = pnand %p1446_p11, %p1440_p8 }
0x1634   :  { %1450 = shalt.err (!%p1447_p12)
}
0x1635   :  { %s1451_s23 = scalar_lea.hbm %s1781_s12, 32 }
0x1636   :  { %p1452_p13 = scmp.ne.s32.totalorder %s1781_s12, %s1451_s23  ;;  %p1455_p0 = scmp.lt.u32.totalorder %s1451_s23, %s1781_s12 }
0x1638   :  { %p1457_p1 = pnand %p1455_p0, %p1452_p13 }
0x163a   :  { %1460 = shalt.err (!%p1457_p1)
}
0x163b   :  { %1141 = dma.vmem_to_hbm [thread:$0]  %s1139_s13, 32, %s1781_s12, [#allocation5]   ;;  %v1165_v21 = vld [vmem:[%s1776_s7] ss:$0 sm:$0xff]  ;;  %vm1107_vm11 = vcmask 195584  }
0x16f4   :  { %v1320_v22 = vpop.f32.mrb[8].mxu1 }
0x16f5   :  { %v1104_v23 = vadd.f32 %v1320_v22, %v1165_v21  ;;  %v1098_v24 = vpop.f32.mrb[9].mxu1 }
0x16f6   :  { %v1099_v7 = vadd.f32 %v1165_v21, %v1098_v24 }
0x16f7   :  { %1109 = vst.msk [vmem:[%s1779_s10 + $0x8] sm:$0xff] %vm1107_vm11, %v1104_v23 }
0x16f8   :  { %1108 = vst.msk [vmem:[%s1779_s10] sm:$0xff] %vm1107_vm11, %v1099_v7 }
0x16f9   :  { %1461 = dma.done.wait [#allocation3], 32  }
0x16fa   :  { %1462 = vsyncadd [#allocation3], 4294967264 }
0x16fb   :  { %1463 = dma.done.wait [#allocation5], 32  }
0x16fc   :  { %1464 = vsyncadd [#allocation5], 4294967264 }
0x16fd   :  { %1150 = vsyncpa [#allocation3], 1 }
0x16fe   :  { %1151 = vsyncpa [#allocation5], 1 }

</bundles_post_ra>
